<compile_context>
chip_gen: v5e
topology: v5e:2x2
jax: 0.10.0
libtpu: 0.0.40
codegen_flags: <defaults>
</compile_context>

<pallas_src>
import functools

import jax
import jax.numpy as jnp
from jax.experimental import pallas as pl
from jax.experimental.pallas import tpu as pltpu

_LANES = 128
_MIN_ROWS = 32           # int8 mask output => keep row counts a multiple of 32
_MAX_BLOCK_ROWS = 2048   # ~4.5 MiB of double-buffered VMEM per grid step


def _threshold_u32(keep_rate):
    # torch: floor(rand + keep) == 1  <=>  rand >= 1 - keep
    # with raw u32 bits u (rand = u / 2^32):  keep  <=>  u >= (1-keep) * 2^32
    return min(int(round((1.0 - keep_rate) * 2.0 ** 32)), 2 ** 32 - 1)


def _drop_edge_prng_kernel(seed_ref, vals_ref, out_vals_ref, mask_ref, *,
                           keep_threshold, inv_keep):
    # Independent stream per grid block: hash(seed, block index).
    pltpu.prng_seed(seed_ref[0], pl.program_id(0))
    bits = pltpu.prng_random_bits(vals_ref.shape)
    if bits.dtype != jnp.uint32:
        bits = pltpu.bitcast(bits, jnp.uint32)
    m = bits >= jnp.uint32(keep_threshold)
    out_vals_ref[...] = jnp.where(
        m, vals_ref[...] * jnp.float32(inv_keep), jnp.float32(0.0)
    )
    mask_ref[...] = m.astype(jnp.int8)


def _drop_edge_bits_kernel(vals_ref, bits_ref, out_vals_ref, mask_ref, *,
                           keep_threshold, inv_keep):
    m = bits_ref[...] >= jnp.uint32(keep_threshold)
    out_vals_ref[...] = jnp.where(
        m, vals_ref[...] * jnp.float32(inv_keep), jnp.float32(0.0)
    )
    mask_ref[...] = m.astype(jnp.int8)


@functools.partial(jax.jit, static_argnames=("keep_rate", "block_rows"))
def _drop_edge_pallas_prng(vals_padded, seed, keep_rate, block_rows):
    R, L = vals_padded.shape
    grid = (R // block_rows,)

    kernel = functools.partial(
        _drop_edge_prng_kernel,
        keep_threshold=_threshold_u32(keep_rate),
        inv_keep=1.0 / keep_rate,
    )
    # 4 B vals in + 4 B vals out + 1 B mask out per element (bits are on-chip).
    cost = pl.CostEstimate(flops=2 * R * L, transcendentals=0,
                           bytes_accessed=9 * R * L)

    return pl.pallas_call(
        kernel,
        out_shape=(
            jax.ShapeDtypeStruct((R, L), jnp.float32),
            jax.ShapeDtypeStruct((R, L), jnp.int8),
        ),
        grid_spec=pltpu.PrefetchScalarGridSpec(
            num_scalar_prefetch=1,
            grid=grid,
            in_specs=[pl.BlockSpec((block_rows, L), lambda i, s: (i, 0))],
            out_specs=[
                pl.BlockSpec((block_rows, L), lambda i, s: (i, 0)),
                pl.BlockSpec((block_rows, L), lambda i, s: (i, 0)),
            ],
        ),
        compiler_params=pltpu.CompilerParams(
            dimension_semantics=("parallel",),
        ),
        cost_estimate=cost,
    )(seed, vals_padded)


@functools.partial(jax.jit, static_argnames=("keep_rate", "block_rows"))
def _drop_edge_pallas_bits(vals_padded, rand_bits, keep_rate, block_rows):
    R, L = vals_padded.shape
    grid = (R // block_rows,)

    kernel = functools.partial(
        _drop_edge_bits_kernel,
        keep_threshold=_threshold_u32(keep_rate),
        inv_keep=1.0 / keep_rate,
    )
    # 4 B vals in + 4 B bits in + 4 B vals out + 1 B mask out per element.
    cost = pl.CostEstimate(flops=2 * R * L, transcendentals=0,
                           bytes_accessed=13 * R * L)

    return pl.pallas_call(
        kernel,
        out_shape=(
            jax.ShapeDtypeStruct((R, L), jnp.float32),
            jax.ShapeDtypeStruct((R, L), jnp.int8),
        ),
        grid_spec=pltpu.PrefetchScalarGridSpec(
            num_scalar_prefetch=0,
            grid=grid,
            in_specs=[
                pl.BlockSpec((block_rows, L), lambda i: (i, 0)),
                pl.BlockSpec((block_rows, L), lambda i: (i, 0)),
            ],
            out_specs=[
                pl.BlockSpec((block_rows, L), lambda i: (i, 0)),
                pl.BlockSpec((block_rows, L), lambda i: (i, 0)),
            ],
        ),
        compiler_params=pltpu.CompilerParams(
            dimension_semantics=("parallel",),
        ),
        cost_estimate=cost,
    )(vals_padded, rand_bits)


def sp_adj_drop_edge(idxs, vals, adj_shape, keep_rate, seed=0):
    """Pallas version of SpAdjDropEdge.forward.

    Returns (idxs, new_vals, mask) with static shapes: dropped edges have
    value 0.0 in new_vals; `mask` tells which edges survived.
    """
    if keep_rate == 1.0:
        return idxs, vals, jnp.ones((vals.shape[0],), dtype=jnp.bool_)

    E = vals.shape[0]
    rows_needed = -(-E // _LANES)  # ceil div
    if rows_needed <= _MAX_BLOCK_ROWS:
        block_rows = max(_MIN_ROWS, -(-rows_needed // _MIN_ROWS) * _MIN_ROWS)
        rows = block_rows
    else:
        block_rows = _MAX_BLOCK_ROWS
        rows = -(-rows_needed // block_rows) * block_rows

    pad = rows * _LANES - E
    vals_p = jnp.pad(vals.astype(jnp.float32), (0, pad)).reshape(rows, _LANES)
    # TODO(synk): for repeated calls, keep edge values resident in this padded
    # (rows, 128) layout to avoid the pad/slice HBM round-trip every call.

    if jax.default_backend() == "tpu":
        seed_arr = jnp.asarray([seed], dtype=jnp.int32)
        out_vals, out_mask = _drop_edge_pallas_prng(
            vals_p, seed_arr, float(keep_rate), block_rows
        )
    else:
        # Non-TPU / interpret environments: the on-chip PRNG primitives have no
        # lowering there, so stream XLA-generated bits through the kernel.
        rand_bits = jax.random.bits(
            jax.random.PRNGKey(seed), (rows, _LANES), dtype=jnp.uint32
        )
        out_vals, out_mask = _drop_edge_pallas_bits(
            vals_p, rand_bits, float(keep_rate), block_rows
        )

    new_vals = out_vals.reshape(-1)[:E]
    mask = out_mask.reshape(-1)[:E].astype(jnp.bool_)
    # TODO(synk): dynamic-shape compaction of (idxs, vals) by `mask` (torch's
    # boolean indexing) has no static-shape Pallas/JAX equivalent; explicit
    # zeros are kept instead, which yields the same sparse matrix.
    return idxs, new_vals, mask


if __name__ == "__main__":
    key = jax.random.PRNGKey(0)
    k_idx, k_val = jax.random.split(key)

    num_nodes = 64
    num_edges = 500
    keep_rate = 0.7

    idxs = jax.random.randint(k_idx, (2, num_edges), 0, num_nodes, dtype=jnp.int32)
    vals = jax.random.uniform(k_val, (num_edges,), dtype=jnp.float32) + 0.1

    new_idxs, new_vals, mask = sp_adj_drop_edge(
        idxs, vals, (num_nodes, num_nodes), keep_rate, seed=0
    )
    jax.block_until_ready((new_idxs, new_vals, mask))

    # sanity: surviving edges scaled by 1/keep_rate, dropped edges are 0
    kept = mask
    ok_scale = bool(
        jnp.allclose(
            jnp.where(kept, new_vals, 0.0),
            jnp.where(kept, vals / keep_rate, 0.0),
            rtol=1e-6, atol=1e-6,
        )
    )
    ok_zero = bool(jnp.all(jnp.where(kept, 0.0, new_vals) == 0.0))
    frac = float(jnp.mean(kept.astype(jnp.float32)))
    ok_frac = 0.45 < frac < 0.92  # generous bounds for keep=0.7, E=500
    assert ok_scale and ok_zero and ok_frac
    assert new_vals.shape == (num_edges,) and new_idxs.shape == (2, num_edges)

    # determinism: same seed => same mask
    _, nv2, m2 = sp_adj_drop_edge(idxs, vals, (num_nodes, num_nodes), keep_rate, seed=0)
    assert bool(jnp.array_equal(m2, mask)) and bool(jnp.array_equal(nv2, new_vals))

    # multi-block path (2 grid steps of 2048x128): checks per-block seeding
    big_E = 300_000
    big_vals = jax.random.uniform(jax.random.PRNGKey(1), (big_E,), jnp.float32) + 0.1
    big_idxs = jnp.zeros((2, big_E), jnp.int32)
    _, big_new, big_mask = sp_adj_drop_edge(
        big_idxs, big_vals, (num_nodes, num_nodes), keep_rate, seed=3
    )
    jax.block_until_ready((big_new, big_mask))
    big_frac = float(jnp.mean(big_mask.astype(jnp.float32)))
    assert abs(big_frac - keep_rate) < 0.01  # ~12 sigma for E=300k
    assert bool(
        jnp.allclose(
            jnp.where(big_mask, big_new, 0.0),
            jnp.where(big_mask, big_vals / keep_rate, 0.0),
            rtol=1e-6, atol=1e-6,
        )
    )
    # second grid block must not replay the first block's random stream
    tail = big_E - _MAX_BLOCK_ROWS * _LANES
    assert not bool(
        jnp.array_equal(big_mask[:tail], big_mask[_MAX_BLOCK_ROWS * _LANES:])
    )

    print("KERNEL_OK")
</pallas_src>

<mosaic_0001>
module attributes {stable_mosaic.version = 11 : i64} {
  func.func @_drop_edge_bits_kernel(%arg0: i32, %arg1: memref<32x128xf32, #tpu.memory_space<vmem>>, %arg2: memref<32x128xi32, #tpu.memory_space<vmem>>, %arg3: memref<32x128xf32, #tpu.memory_space<vmem>>, %arg4: memref<32x128xi8, #tpu.memory_space<vmem>>) attributes {dimension_semantics = [#tpu.dimension_semantics<parallel>], iteration_bounds = array<i64: 1>, scalar_prefetch = 0 : i64, scratch_operands = 0 : i64, tpu.core_type = #tpu.core_type<tc>, window_params = [{transform_indices = @transform_0, window_bounds = array<i64: 32, 128>}, {transform_indices = @transform_1, window_bounds = array<i64: 32, 128>}, {transform_indices = @transform_2, window_bounds = array<i64: 32, 128>}, {transform_indices = @transform_3, window_bounds = array<i64: 32, 128>}]} {
    %c0 = arith.constant 0 : index
    %c0_0 = arith.constant 0 : index
    %0 = vector.load %arg2[%c0, %c0_0] : memref<32x128xi32, #tpu.memory_space<vmem>>, vector<32x128xi32>
    %c1288490189_i32 = arith.constant 1288490189 : i32
    %1 = vector.broadcast %c1288490189_i32 : i32 to vector<32x128xi32>
    %2 = arith.cmpi uge, %0, %1 : vector<32x128xi32>
    %c0_1 = arith.constant 0 : index
    %c0_2 = arith.constant 0 : index
    %3 = vector.load %arg1[%c0_1, %c0_2] : memref<32x128xf32, #tpu.memory_space<vmem>>, vector<32x128xf32>
    %cst = arith.constant 1.42857146 : f32
    %4 = vector.broadcast %cst : f32 to vector<32x128xf32>
    %5 = arith.mulf %3, %4 : vector<32x128xf32>
    %cst_3 = arith.constant 0.000000e+00 : f32
    %6 = vector.broadcast %cst_3 : f32 to vector<32x128xf32>
    %7 = arith.select %2, %5, %6 : vector<32x128xi1>, vector<32x128xf32>
    %c0_4 = arith.constant 0 : index
    %c0_5 = arith.constant 0 : index
    %8 = vector.load %arg3[%c0_4, %c0_5] : memref<32x128xf32, #tpu.memory_space<vmem>>, vector<32x128xf32>
    tpu.vector_store %arg3[%c0_4, %c0_5], %7 {strides = array<i32>} : memref<32x128xf32, #tpu.memory_space<vmem>>, vector<32x128xf32>,
    %9 = arith.extui %2 : vector<32x128xi1> to vector<32x128xi8>
    %c0_6 = arith.constant 0 : index
    %c0_7 = arith.constant 0 : index
    %10 = vector.load %arg4[%c0_6, %c0_7] : memref<32x128xi8, #tpu.memory_space<vmem>>, vector<32x128xi8>
    tpu.vector_store %arg4[%c0_6, %c0_7], %9 {strides = array<i32>} : memref<32x128xi8, #tpu.memory_space<vmem>>, vector<32x128xi8>,
    return
  }
  func.func @transform_0(%arg0: i32) -> (i32, i32) {
    %c0_i32 = arith.constant 0 : i32
    %c0_i32_0 = arith.constant 0 : i32
    return %arg0, %c0_i32 : i32, i32
  }
  func.func @transform_1(%arg0: i32) -> (i32, i32) {
    %c0_i32 = arith.constant 0 : i32
    %c0_i32_0 = arith.constant 0 : i32
    return %arg0, %c0_i32 : i32, i32
  }
  func.func @transform_2(%arg0: i32) -> (i32, i32) {
    %c0_i32 = arith.constant 0 : i32
    %c0_i32_0 = arith.constant 0 : i32
    return %arg0, %c0_i32 : i32, i32
  }
  func.func @transform_3(%arg0: i32) -> (i32, i32) {
    %c0_i32 = arith.constant 0 : i32
    %c0_i32_0 = arith.constant 0 : i32
    return %arg0, %c0_i32 : i32, i32
  }
}

</mosaic_0001>

<bundles_post_ra>
// kernel: _drop_edge_pallas_bits.1
= control target key start
LH: loop header
LB: loop body
LE: loop exit
PB: predicated region body
PF: predicated region fallthrough
CT: control target
= control target key end

     0   :  { %9 = vsyncpa [#allocation3], 0  ;;  %s299_s0 = inlined_call_operand.hbm [shape: f32[32,128], index: 0, kind: input, shape index: {}]   ;;  %s300_s1 = inlined_call_operand.hbm [shape: u32[32,128], index: 1, kind: input, shape index: {}]   ;;  %s301_s2 = inlined_call_operand.hbm [shape: f32[32,128], index: 2, kind: output, shape index: {0}]   ;;  %s302_s3 = inlined_call_operand.hbm [shape: s8[32,128], index: 3, kind: output, shape index: {1}]  }
   0x1   :  { %10 = vsyncpa [#allocation6], 0 }
   0x2   :  { %11 = vsyncpa [#allocation4], 0 }
   0x3   :  { %12 = vsyncpa [#allocation9], 0  ;;  %s17_s14 = sshll.u32 %s299_s0, 4  ;;  %s240_s15 = smov [#allocation2]   ;;  %s18_s14 = int_to_ptr.hbm [resolvable:$true] %s17_s14 }
   0x4   :  { %s19_s16 = sshll.u32 %s240_s15, 4  ;;  %s30_s19 = sshll.u32 %s300_s1, 4  ;;  %s20_s16 = int_to_ptr.vmem [resolvable:$true] %s19_s16  ;;  %s31_s19 = int_to_ptr.hbm [resolvable:$true] %s30_s19 }
   0x5   :  { %s241_s20 = smov 128   ;;  %s242_s21 = smov 8  }
   0x6   :  { %25 = dma.hbm_to_vmem [thread:$0]  %s18_s14, 512, %s20_s16, [#allocation3], %s241_s20, %s241_s20, %s242_s21  }
   0x7   :  { %s243_s22 = smov [#allocation5]  }
   0x8   :  { %s32_s23 = sshll.u32 %s243_s22, 4  ;;  %s33_s23 = int_to_ptr.vmem [resolvable:$true] %s32_s23 }
   0x9   :  { %38 = dma.hbm_to_vmem [thread:$0]  %s31_s19, 512, %s33_s23, [#allocation6], %s241_s20, %s241_s20, %s242_s21  }
   0xa   :  { %232 = dma.done.wait [#allocation3], 512  }
   0xb   :  { %233 = vsyncadd [#allocation3], 4294966784 }
   0xc   :  { %234 = dma.done.wait [#allocation6], 512  }
   0xd   :  { %235 = vsyncadd [#allocation6], 4294966784  ;;  %v49_v0 = vld [vmem:[#allocation5] sm:$0xff]  ;;  %v50_v2 = vld [vmem:[#allocation5 + $0x8] sm:$0xff]  ;;  %s244_s0 = smov [#allocation7]   ;;  %s95_s26 = sshll.u32 %s301_s2, 4  ;;  %s96_s26 = int_to_ptr.hbm [resolvable:$true] %s95_s26 }
   0xe   :  { %v65_v1 = vld [vmem:[#allocation2] sm:$0xff]  ;;  %s279_s1 = sshll.u32 %s244_s0, 4  ;;  %v125_v3 = vxor.u32 2147483648, %v49_v0  ;;  %v126_v5 = vxor.u32 2147483648, %v50_v2  ;;  %v66_v6 = vld [vmem:[#allocation2 + $0x8] sm:$0xff]  ;;  %v51_v7 = vld [vmem:[#allocation5 + $0x10] sm:$0xff]  ;;  %s94_s1 = int_to_ptr.vmem [resolvable:$true] %s279_s1 }
   0xf   :  { %v69_v4 = vmul.f32 1.4285715, %v65_v1  ;;  %v70_v8 = vmul.f32 1.4285715, %v66_v6  ;;  %v127_v9 = vxor.u32 2147483648, %v51_v7  ;;  %v67_v10 = vld [vmem:[#allocation2 + $0x10] sm:$0xff] }
  0x10   :  { %v52_v11 = vld [vmem:[#allocation5 + $0x18] sm:$0xff]  ;;  %vm55_vm0 = vcmp.ge.s32.totalorder %v125_v3, 3435973837  ;;  %vm58_vm1 = vcmp.ge.s32.totalorder %v126_v5, 3435973837  ;;  %v245_v20 = vmov 0  }
  0x11   :  { %v68_v12 = vld [vmem:[#allocation2 + $0x18] sm:$0xff]  ;;  %v71_v13 = vmul.f32 1.4285715, %v67_v10  ;;  %v73_v14 = vsel %vm55_vm0, %v69_v4, 0.0  ;;  %v74_v15 = vsel %vm58_vm1, %v70_v8, 0.0  ;;  %vm81_vm2 = vmpackc.low %vm58_vm1, %vm55_vm0  ;;  %v128_v17 = vxor.u32 2147483648, %v52_v11 }
  0x12   :  { %vm284_vm3 = vcmp.ge.s32.totalorder %v127_v9, 3435973837  ;;  %77 = vst [vmem:[#allocation7] sm:$0xff] %v73_v14  ;;  %v72_v19 = vmul.f32 1.4285715, %v68_v12  ;;  %s246_s2 = smov [#allocation8]  }
  0x13   :  { %v75_v18 = vsel %vm284_vm3, %v71_v13, 0.0  ;;  %78 = vst [vmem:[#allocation7 + $0x8] sm:$0xff] %v74_v15  ;;  %vm64_vm4 = vcmp.ge.s32.totalorder %v128_v17, 3435973837  ;;  %v83_v21 = vsel %vm81_vm2, 16711935, %v245_v20 }
  0x14   :  { %79 = vst [vmem:[#allocation7 + $0x10] sm:$0xff] %v75_v18  ;;  %v76_v22 = vsel %vm64_vm4, %v72_v19, 0.0  ;;  %vm82_vm5 = vmpackc.low %vm64_vm4, %vm284_vm3  ;;  %s107_s27 = sshll.u32 %s246_s2, 4  ;;  %s109_s30 = sshll.u32 %s302_s3, 4  ;;  %s108_s27 = int_to_ptr.vmem [resolvable:$true] %s107_s27  ;;  %s110_s30 = int_to_ptr.hbm [resolvable:$true] %s109_s30 }
  0x15   :  { %80 = vst [vmem:[#allocation7 + $0x18] sm:$0xff] %v76_v22  ;;  %v84_v23 = vsel %vm82_vm5, 16711935, %v245_v20 }
  0x16   :  { %v85_v24 = vpack.c.b8 %v84_v23, %v83_v21  ;;  %101 = dma.vmem_to_hbm [thread:$0]  %s94_s1, 512, %s96_s26, [#allocation4], %s241_s20, %s241_s20, %s242_s21  }
  0x18   :  { %vm86_vm6 = vnez %v85_v24 }
  0x19   :  { %v87_v25 = vsel %vm86_vm6, 16843009, %v245_v20 }
  0x1a   :  { %88 = vst [vmem:[#allocation8] sm:$0xff] %v87_v25 }
  0x1b   :  { %112 = dma.vmem_to_hbm [thread:$0]  %s108_s27, 128, %s110_s30, [#allocation9]  }
  0x1c   :  { %236 = dma.done.wait [#allocation4], 512  }
  0x1d   :  { %237 = vsyncadd [#allocation4], 4294966784 }
  0x1e   :  { %238 = dma.done.wait [#allocation9], 128  }
  0x1f   :  { %239 = vsyncadd [#allocation9], 4294967168 }
  0x20   :  { %121 = vsyncpa [#allocation3], 1 }
  0x21   :  { %122 = vsyncpa [#allocation6], 1 }
  0x22   :  { %123 = vsyncpa [#allocation4], 1 }
  0x23   :  { %124 = vsyncpa [#allocation9], 1 }

</bundles_post_ra>
